<compile_context>
chip_gen: v6e
topology: v6e:2x2x1
jax: 0.10.0
libtpu: 0.0.40
codegen_flags: <defaults>
</compile_context>

<pallas_src>
import jax
import jax.numpy as jnp
import numpy as np
from jax.experimental import pallas as pl
from jax.experimental.pallas import tpu as pltpu


def _pick_channel_block(nc, h, hout, wout, itemsize, budget_bytes=8 << 20):
    """Largest channel block that keeps double-buffered tiles within a safe VMEM budget.

    Cb is always either a multiple of 128 dividing nc, or nc itself, so the BlockSpec
    lane-dim constraint is always satisfied.
    """
    per_ch = (2 * h * wout + hout * wout) * itemsize * 2  # xe + xo + out, double-buffered
    cap = max(1, budget_bytes // per_ch)
    if nc >= 256:
        cap = min(cap, nc // 2)  # keep >=2 grid steps so both v7x TensorCores get work
    candidates = [c for c in range(128, nc + 1, 128) if nc % c == 0]
    if not candidates:
        return nc  # nc < 128 (tiny test) or no 128-multiple divides it: take full axis
    fitting = [c for c in candidates if c <= cap]
    # TODO(synk): for very large spatial extents also block H (with a 1-row halo) so the
    # minimum 128-channel tile always fits VMEM.
    return max(fitting) if fitting else min(candidates)


def _make_kernel(H, Hout, Wout, neg_value):
    Hf = (H // 2) * 2
    h_odd = (H % 2) == 1

    def row_window_max(a):
        # a: (H, Wc, cb) -> (Hout, Wc, cb), r[i] = max(a[2i-1], a[2i], a[2i+1]) with
        # -inf outside [0, H). Even/odd rows come from a free leading-dim reshape.
        wc, cb = a.shape[1], a.shape[2]
        neg_row = jnp.full((1, wc, cb), neg_value, a.dtype)
        if Hf == 0:
            ev = a[0:1]
            od = neg_row
        else:
            ar = a[:Hf].reshape(Hf // 2, 2, wc, cb)
            ev = ar[:, 0]  # rows 0, 2, 4, ...
            od = ar[:, 1]  # rows 1, 3, 5, ...
            if h_odd:
                ev = jnp.concatenate([ev, a[Hf:Hf + 1]], axis=0)
                od = jnp.concatenate([od, neg_row], axis=0)
        if Hout > 1:
            od_up = jnp.concatenate([neg_row, od[:Hout - 1]], axis=0)  # od[i-1]
        else:
            od_up = neg_row
        return jnp.maximum(jnp.maximum(ev, od), od_up)

    def kernel(xe_ref, xo_ref, o_ref):
        re = row_window_max(xe_ref[...])  # even columns -> (Hout, Wout, cb)
        ro = row_window_max(xo_ref[...])  # odd columns  -> (Hout, Wout, cb)
        cb = ro.shape[-1]
        neg_col = jnp.full((Hout, 1, cb), neg_value, ro.dtype)
        if Wout > 1:
            ro_left = jnp.concatenate([neg_col, ro[:, :Wout - 1, :]], axis=1)  # ro[:, j-1]
        else:
            ro_left = neg_col
        o_ref[...] = jnp.maximum(jnp.maximum(re, ro), ro_left)

    return kernel


def maxpool_d(x):
    """MaxPool2d(kernel_size=3, stride=2, padding=1) on an NCHW tensor."""
    N, C, H, W = x.shape
    nc = N * C
    Hout = (H + 1) // 2
    Wout = (W + 1) // 2
    dtype = x.dtype
    if jnp.issubdtype(dtype, jnp.floating):
        neg_value = float("-inf")
    else:
        neg_value = int(jnp.iinfo(dtype).min)

    # Channels-last layout + even/odd column split (layout plumbing, fused by XLA).
    xt = jnp.transpose(x.reshape(nc, H, W), (1, 2, 0))   # (H, W, nc)
    xe = xt[:, 0::2, :]                                  # (H, Wout, nc)  cols 0,2,4,...
    xo = xt[:, 1::2, :]                                  # (H, W//2, nc)  cols 1,3,5,...
    if W % 2 == 1:
        xo = jnp.pad(xo, ((0, 0), (0, 1), (0, 0)), constant_values=neg_value)

    cb = _pick_channel_block(nc, H, Hout, Wout, np.dtype(dtype).itemsize)
    grid = (nc // cb,)

    kernel = _make_kernel(H, Hout, Wout, neg_value)
    out_t = pl.pallas_call(
        kernel,
        out_shape=jax.ShapeDtypeStruct((Hout, Wout, nc), dtype),
        grid=grid,
        in_specs=[
            pl.BlockSpec((H, Wout, cb), lambda i: (0, 0, i)),
            pl.BlockSpec((H, Wout, cb), lambda i: (0, 0, i)),
        ],
        out_specs=pl.BlockSpec((Hout, Wout, cb), lambda i: (0, 0, i)),
        compiler_params=pltpu.CompilerParams(
            dimension_semantics=("parallel",),
            vmem_limit_bytes=32 * 1024 * 1024,
        ),
    )(xe, xo)

    return jnp.transpose(out_t, (2, 0, 1)).reshape(N, C, Hout, Wout)


def _reference(x):
    return jax.lax.reduce_window(
        x, -jnp.inf, jax.lax.max,
        window_dimensions=(1, 1, 3, 3),
        window_strides=(1, 1, 2, 2),
        padding=((0, 0), (0, 0), (1, 1), (1, 1)))


if __name__ == "__main__":
    key = jax.random.PRNGKey(0)
    x = jax.random.normal(key, (2, 4, 16, 16), dtype=jnp.float32)  # NCHW

    out = jax.block_until_ready(maxpool_d(x))
    assert out.shape == (2, 4, 8, 8), out.shape
    np.testing.assert_array_equal(np.asarray(out), np.asarray(_reference(x)))

    # A lane-dense configuration (channel block = 128 sits on the 128-lane axis).
    x2 = jax.random.normal(jax.random.PRNGKey(0), (1, 128, 32, 32), dtype=jnp.float32)
    out2 = jax.block_until_ready(maxpool_d(x2))
    np.testing.assert_array_equal(np.asarray(out2), np.asarray(_reference(x2)))

    print("KERNEL_OK")
</pallas_src>

<mosaic_0001>
module attributes {stable_mosaic.version = 11 : i64} {
  func.func @kernel(%arg0: i32, %arg1: memref<16x8x8xf32, #tpu.memory_space<vmem>>, %arg2: memref<16x8x8xf32, #tpu.memory_space<vmem>>, %arg3: memref<8x8x8xf32, #tpu.memory_space<vmem>>) attributes {dimension_semantics = [#tpu.dimension_semantics<parallel>], iteration_bounds = array<i64: 1>, scalar_prefetch = 0 : i64, scratch_operands = 0 : i64, tpu.core_type = #tpu.core_type<tc>, window_params = [{transform_indices = @transform_0, window_bounds = array<i64: 16, 8, 8>}, {transform_indices = @transform_1, window_bounds = array<i64: 16, 8, 8>}, {transform_indices = @transform_2, window_bounds = array<i64: 8, 8, 8>}]} {
    %c0 = arith.constant 0 : index
    %c0_0 = arith.constant 0 : index
    %c0_1 = arith.constant 0 : index
    %0 = vector.load %arg1[%c0, %c0_0, %c0_1] : memref<16x8x8xf32, #tpu.memory_space<vmem>>, vector<16x8x8xf32>
    %cst = arith.constant 0xFF800000 : f32
    %1 = vector.broadcast %cst : f32 to vector<1x8x8xf32>
    %2 = vector.shape_cast %0 : vector<16x8x8xf32> to vector<8x2x8x8xf32>
    %3 = vector.extract_strided_slice %2 {offsets = [0, 0, 0, 0], sizes = [8, 1, 8, 8], strides = [1, 1, 1, 1]} : vector<8x2x8x8xf32> to vector<8x1x8x8xf32>
    %4 = vector.shape_cast %3 : vector<8x1x8x8xf32> to vector<8x8x8xf32>
    %5 = vector.extract_strided_slice %2 {offsets = [0, 1, 0, 0], sizes = [8, 1, 8, 8], strides = [1, 1, 1, 1]} : vector<8x2x8x8xf32> to vector<8x1x8x8xf32>
    %6 = vector.shape_cast %5 : vector<8x1x8x8xf32> to vector<8x8x8xf32>
    %7 = vector.extract_strided_slice %6 {offsets = [0, 0, 0], sizes = [7, 8, 8], strides = [1, 1, 1]} : vector<8x8x8xf32> to vector<7x8x8xf32>
    %8 = tpu.concatenate %1, %7 in 0 : vector<1x8x8xf32>, vector<7x8x8xf32> -> vector<8x8x8xf32>
    %9 = arith.maximumf %4, %6 : vector<8x8x8xf32>
    %10 = arith.maximumf %9, %8 : vector<8x8x8xf32>
    %c0_2 = arith.constant 0 : index
    %c0_3 = arith.constant 0 : index
    %c0_4 = arith.constant 0 : index
    %11 = vector.load %arg2[%c0_2, %c0_3, %c0_4] : memref<16x8x8xf32, #tpu.memory_space<vmem>>, vector<16x8x8xf32>
    %cst_5 = arith.constant 0xFF800000 : f32
    %12 = vector.broadcast %cst_5 : f32 to vector<1x8x8xf32>
    %13 = vector.shape_cast %11 : vector<16x8x8xf32> to vector<8x2x8x8xf32>
    %14 = vector.extract_strided_slice %13 {offsets = [0, 0, 0, 0], sizes = [8, 1, 8, 8], strides = [1, 1, 1, 1]} : vector<8x2x8x8xf32> to vector<8x1x8x8xf32>
    %15 = vector.shape_cast %14 : vector<8x1x8x8xf32> to vector<8x8x8xf32>
    %16 = vector.extract_strided_slice %13 {offsets = [0, 1, 0, 0], sizes = [8, 1, 8, 8], strides = [1, 1, 1, 1]} : vector<8x2x8x8xf32> to vector<8x1x8x8xf32>
    %17 = vector.shape_cast %16 : vector<8x1x8x8xf32> to vector<8x8x8xf32>
    %18 = vector.extract_strided_slice %17 {offsets = [0, 0, 0], sizes = [7, 8, 8], strides = [1, 1, 1]} : vector<8x8x8xf32> to vector<7x8x8xf32>
    %19 = tpu.concatenate %12, %18 in 0 : vector<1x8x8xf32>, vector<7x8x8xf32> -> vector<8x8x8xf32>
    %20 = arith.maximumf %15, %17 : vector<8x8x8xf32>
    %21 = arith.maximumf %20, %19 : vector<8x8x8xf32>
    %cst_6 = arith.constant 0xFF800000 : f32
    %22 = vector.broadcast %cst_6 : f32 to vector<8x1x8xf32>
    %23 = vector.extract_strided_slice %21 {offsets = [0, 0, 0], sizes = [8, 7, 8], strides = [1, 1, 1]} : vector<8x8x8xf32> to vector<8x7x8xf32>
    %24 = tpu.concatenate %22, %23 in 1 : vector<8x1x8xf32>, vector<8x7x8xf32> -> vector<8x8x8xf32>
    %25 = arith.maximumf %10, %21 : vector<8x8x8xf32>
    %26 = arith.maximumf %25, %24 : vector<8x8x8xf32>
    %c0_7 = arith.constant 0 : index
    %c0_8 = arith.constant 0 : index
    %c0_9 = arith.constant 0 : index
    %27 = vector.load %arg3[%c0_7, %c0_8, %c0_9] : memref<8x8x8xf32, #tpu.memory_space<vmem>>, vector<8x8x8xf32>
    tpu.vector_store %arg3[%c0_7, %c0_8, %c0_9], %26 {strides = array<i32>} : memref<8x8x8xf32, #tpu.memory_space<vmem>>, vector<8x8x8xf32>,
    return
  }
  func.func @transform_0(%arg0: i32) -> (i32, i32, i32) {
    %c0_i32 = arith.constant 0 : i32
    %c0_i32_0 = arith.constant 0 : i32
    %c0_i32_1 = arith.constant 0 : i32
    return %c0_i32, %c0_i32_0, %arg0 : i32, i32, i32
  }
  func.func @transform_1(%arg0: i32) -> (i32, i32, i32) {
    %c0_i32 = arith.constant 0 : i32
    %c0_i32_0 = arith.constant 0 : i32
    %c0_i32_1 = arith.constant 0 : i32
    return %c0_i32, %c0_i32_0, %arg0 : i32, i32, i32
  }
  func.func @transform_2(%arg0: i32) -> (i32, i32, i32) {
    %c0_i32 = arith.constant 0 : i32
    %c0_i32_0 = arith.constant 0 : i32
    %c0_i32_1 = arith.constant 0 : i32
    return %c0_i32, %c0_i32_0, %arg0 : i32, i32, i32
  }
}

</mosaic_0001>

<bundles_post_ra>
// kernel: tpu_custom_call.1
= control target key start
LH: loop header
LB: loop body
LE: loop exit
PB: predicated region body
PF: predicated region fallthrough
CT: control target
= control target key end

     0   :  { %vm98_vm0 = vcmask 1040384   ;;  %vm123_vm1 = vcmask 64512   ;;  %s306_s0 = inlined_call_operand.vmem [shape: f32[16,8,8], index: 0, kind: input, shape index: {}]   ;;  %s307_s1 = inlined_call_operand.vmem [shape: f32[16,8,8], index: 1, kind: input, shape index: {}]   ;;  %s308_s2 = inlined_call_operand.hbm [shape: f32[8,8,8], index: 2, kind: output, shape index: {}]  }
   0x1   :  { %v12_v0 = vld [vmem:[%s306_s0] sm:$0xff]  ;;  %v13_v1 = vld [vmem:[%s306_s0 + $0x8] sm:$0xff]  ;;  %v14_v5 = vld [vmem:[%s306_s0 + $0x10] sm:$0xff] }
   0x2   :  { %v43_v2 = vld [vmem:[%s307_s1] sm:$0xff]  ;;  %v28_v3 = vmax.f32 %v12_v0, %v13_v1  ;;  %v44_v4 = vld [vmem:[%s307_s1 + $0x8] sm:$0xff]  ;;  %v15_v6 = vld [vmem:[%s306_s0 + $0x18] sm:$0xff] }
   0x3   :  { %v59_v7 = vmax.f32 %v43_v2, %v44_v4  ;;  %v29_v8 = vmax.f32 %v14_v5, %v15_v6  ;;  %v45_v9 = vld [vmem:[%s307_s1 + $0x10] sm:$0xff]  ;;  %v46_v10 = vld [vmem:[%s307_s1 + $0x18] sm:$0xff]  ;;  %v16_v11 = vld [vmem:[%s306_s0 + $0x20] sm:$0xff] }
   0x4   :  { %v60_v12 = vmax.f32 %v45_v9, %v46_v10  ;;  %v17_v13 = vld [vmem:[%s306_s0 + $0x28] sm:$0xff]  ;;  %v47_v14 = vld [vmem:[%s307_s1 + $0x20] sm:$0xff]  ;;  %v18_v20 = vld [vmem:[%s306_s0 + $0x30] sm:$0xff] }
   0x5   :  { %v48_v15 = vld [vmem:[%s307_s1 + $0x28] sm:$0xff]  ;;  %v82_v16 = vrot.slane %v59_v7, 7  ;;  %v107_v17 = vmax.f32 %v28_v3, %v59_v7  ;;  %v36_v18 = vmax.f32 %v29_v8, %v13_v1  ;;  %v30_v19 = vmax.f32 %v16_v11, %v17_v13  ;;  %v19_v21 = vld [vmem:[%s306_s0 + $0x38] sm:$0xff]  ;;  %v49_v22 = vld [vmem:[%s307_s1 + $0x30] sm:$0xff] }
   0x6   :  { %v67_v23 = vmax.f32 %v60_v12, %v44_v4  ;;  %v61_v24 = vmax.f32 %v47_v14, %v48_v15  ;;  %v31_v25 = vmax.f32 %v18_v20, %v19_v21  ;;  %v50_v26 = vld [vmem:[%s307_s1 + $0x38] sm:$0xff]  ;;  %v20_v27 = vld [vmem:[%s306_s0 + $0x40] sm:$0xff]  ;;  %v21_v28 = vld [vmem:[%s306_s0 + $0x48] sm:$0xff] }
   0x7   :  { %v99_v29 = vsel %vm98_vm0, -inf, %v82_v16  ;;  %v37_v30 = vmax.f32 %v30_v19, %v15_v6  ;;  %v62_v31 = vmax.f32 %v49_v22, %v50_v26  ;;  %v32_v32 = vmax.f32 %v20_v27, %v21_v28  ;;  %v51_v33 = vld [vmem:[%s307_s1 + $0x40] sm:$0xff]  ;;  %v52_v34 = vld [vmem:[%s307_s1 + $0x48] sm:$0xff]  ;;  %v22_v35 = vld [vmem:[%s306_s0 + $0x50] sm:$0xff] }
   0x8   :  { %v115_v36 = vmax.f32 %v107_v17, %v99_v29  ;;  %v83_v37 = vrot.slane %v67_v23, 7  ;;  %v108_v38 = vmax.f32 %v36_v18, %v67_v23  ;;  %v68_v39 = vmax.f32 %v61_v24, %v46_v10  ;;  %v23_v40 = vld [vmem:[%s306_s0 + $0x58] sm:$0xff]  ;;  %v53_v41 = vld [vmem:[%s307_s1 + $0x50] sm:$0xff]  ;;  %v24_v47 = vld [vmem:[%s306_s0 + $0x60] sm:$0xff] }
   0x9   :  { %v38_v42 = vmax.f32 %v31_v25, %v17_v13  ;;  %v69_v43 = vmax.f32 %v62_v31, %v48_v15  ;;  %v39_v44 = vmax.f32 %v32_v32, %v19_v21  ;;  %v63_v45 = vmax.f32 %v51_v33, %v52_v34  ;;  %v54_v46 = vld [vmem:[%s307_s1 + $0x58] sm:$0xff]  ;;  %v25_v48 = vld [vmem:[%s306_s0 + $0x68] sm:$0xff]  ;;  %v55_v53 = vld [vmem:[%s307_s1 + $0x60] sm:$0xff] }
   0xa   :  { %124 = vst.msk [vmem:[#allocation2] sm:$0xff] %vm123_vm1, %v115_v36  ;;  %v100_v49 = vsel %vm98_vm0, -inf, %v83_v37  ;;  %v84_v50 = vrot.slane %v68_v39, 7  ;;  %v109_v51 = vmax.f32 %v37_v30, %v68_v39  ;;  %v33_v52 = vmax.f32 %v22_v35, %v23_v40  ;;  %v56_v58 = vld [vmem:[%s307_s1 + $0x68] sm:$0xff]  ;;  %v26_v59 = vld [vmem:[%s306_s0 + $0x70] sm:$0xff] }
   0xb   :  { %v116_v54 = vmax.f32 %v108_v38, %v100_v49  ;;  %v85_v55 = vrot.slane %v69_v43, 7  ;;  %v110_v56 = vmax.f32 %v38_v42, %v69_v43  ;;  %v70_v57 = vmax.f32 %v63_v45, %v50_v26 }
   0xc   :  { %7 = vsyncpa [#allocation3], 0  ;;  %v101_v60 = vsel %vm98_vm0, -inf, %v84_v50  ;;  %v40_v61 = vmax.f32 %v33_v52, %v21_v28  ;;  %v64_v62 = vmax.f32 %v53_v41, %v54_v46  ;;  %v34_v63 = vmax.f32 %v24_v47, %v25_v48  ;;  %v27_v0 = vld [vmem:[%s306_s0 + $0x78] sm:$0xff]  ;;  %v57_v1 = vld [vmem:[%s307_s1 + $0x70] sm:$0xff]  ;;  %s173_s0 = smov [#allocation2]  }
   0xd   :  { %v58_v2 = vld [vmem:[%s307_s1 + $0x78] sm:$0xff]  ;;  %125 = vst.msk [vmem:[#allocation2 + $0x8] sm:$0xff] %vm123_vm1, %v116_v54  ;;  %v117_v3 = vmax.f32 %v109_v51, %v101_v60  ;;  %v102_v4 = vsel %vm98_vm0, -inf, %v85_v55  ;;  %v86_v5 = vrot.slane %v70_v57, 7  ;;  %v111_v6 = vmax.f32 %v39_v44, %v70_v57  ;;  %s137_s1 = sshll.u32 %s173_s0, 4  ;;  %s138_s1 = int_to_ptr.vmem [resolvable:$true] %s137_s1 }
   0xe   :  { %v118_v7 = vmax.f32 %v110_v56, %v102_v4  ;;  %v71_v8 = vmax.f32 %v64_v62, %v52_v34  ;;  %v41_v9 = vmax.f32 %v34_v63, %v23_v40  ;;  %v65_v10 = vmax.f32 %v55_v53, %v56_v58  ;;  %s151_s17 = scalar_lea.vmem %s138_s1, 1024  ;;  %p156_p1 = scmp.lt.s32.totalorder %s138_s1, %s138_s1 }
   0xf   :  { %126 = vst.msk [vmem:[#allocation2 + $0x10] sm:$0xff] %vm123_vm1, %v117_v3  ;;  %v103_v11 = vsel %vm98_vm0, -inf, %v86_v5  ;;  %v35_v12 = vmax.f32 %v26_v59, %v27_v0  ;;  %v66_v13 = vmax.f32 %v57_v1, %v58_v2  ;;  %p152_p0 = scmp.ne.s32.totalorder %s138_s1, %s151_s17  ;;  %p157_p2 = scmp.lt.s32.totalorder %s151_s17, %s151_s17 }
  0x10   :  { %127 = vst.msk [vmem:[#allocation2 + $0x18] sm:$0xff] %vm123_vm1, %v118_v7  ;;  %v119_v14 = vmax.f32 %v111_v6, %v103_v11  ;;  %v87_v15 = vrot.slane %v71_v8, 7  ;;  %v112_v16 = vmax.f32 %v40_v61, %v71_v8  ;;  %v72_v17 = vmax.f32 %v65_v10, %v54_v46 }
  0x11   :  { %v42_v18 = vmax.f32 %v35_v12, %v25_v48  ;;  %v73_v19 = vmax.f32 %v66_v13, %v56_v58  ;;  %p158_p3 = por %p157_p2, %p156_p1 }
  0x12   :  { %128 = vst.msk [vmem:[#allocation2 + $0x20] sm:$0xff] %vm123_vm1, %v119_v14  ;;  %v104_v20 = vsel %vm98_vm0, -inf, %v87_v15  ;;  %v88_v21 = vrot.slane %v72_v17, 7  ;;  %v113_v22 = vmax.f32 %v41_v9, %v72_v17 }
  0x13   :  { %v120_v23 = vmax.f32 %v112_v16, %v104_v20  ;;  %v89_v24 = vrot.slane %v73_v19, 7  ;;  %v114_v25 = vmax.f32 %v42_v18, %v73_v19  ;;  %p159_p4 = pnand %p158_p3, %p152_p0 }
  0x14   :  { %v105_v26 = vsel %vm98_vm0, -inf, %v88_v21 }
  0x15   :  { %129 = vst.msk [vmem:[#allocation2 + $0x28] sm:$0xff] %vm123_vm1, %v120_v23  ;;  %v121_v27 = vmax.f32 %v113_v22, %v105_v26  ;;  %v106_v28 = vsel %vm98_vm0, -inf, %v89_v24 }
  0x16   :  { %v122_v29 = vmax.f32 %v114_v25, %v106_v28 }
  0x17   :  { %130 = vst.msk [vmem:[#allocation2 + $0x30] sm:$0xff] %vm123_vm1, %v121_v27 }
  0x18   :  { %131 = vst.msk [vmem:[#allocation2 + $0x38] sm:$0xff] %vm123_vm1, %v122_v29 }
  0x19   :  { %162 = shalt.err (!%p159_p4)
}
  0x1a   :  { %s174_s18 = smov 128   ;;  %s175_s19 = smov 8  }
  0x1b   :  { %143 = dma.vmem_to_hbm [thread:$0]  %s138_s1, 1024, %s308_s2, [#allocation3], %s174_s18, %s174_s18, %s175_s19  }
  0x1c   :  { %171 = dma.done.wait [#allocation3], 1024  }
  0x1d   :  { %172 = vsyncadd [#allocation3], 4294966272 }
  0x1e   :  { %147 = vsyncpa [#allocation3], 1 }

</bundles_post_ra>
